<compile_context>
chip_gen: v6e
topology: v6e:2x2x1
jax: 0.10.0
libtpu: 0.0.40
codegen_flags: <defaults>
</compile_context>

<pallas_src>
import jax
import jax.numpy as jnp
from jax.experimental import pallas as pl
from jax.experimental.pallas import tpu as pltpu


def _round_up(x: int, m: int) -> int:
    return (x + m - 1) // m * m


def _vdn_kernel(q_ref, o_ref):
    # q_ref: (bm, N)        -- rows (batch*time) on sublanes, agents on lanes.
    # o_ref: (bm//128, 128) -- lane-dense per-row sums.
    x = q_ref[...]
    # Layout-preserving split of the row axis: (bm, N) -> (bm//128, 128, N).
    x3 = x.reshape(o_ref.shape[0], o_ref.shape[1], x.shape[-1])
    acc_dtype = jnp.float32 if jnp.issubdtype(x3.dtype, jnp.floating) else jnp.int32
    o_ref[...] = jnp.sum(x3.astype(acc_dtype), axis=-1).astype(o_ref.dtype)


@jax.jit
def vdn_net(q_values: jax.Array) -> jax.Array:
    """Pallas equivalent of VDNNet.forward: sum over agent axis (dim=2), keepdim."""
    B, T, N = q_values.shape
    M = B * T
    dtype = q_values.dtype
    itemsize = jnp.dtype(dtype).itemsize

    # Native layout, free reshape (N is already innermost / contiguous).
    x = q_values.reshape(M, N)

    # Block rows (multiple of 1024 so the (bm//128,128) out block keeps its
    # second-to-last dim a multiple of 8).
    # VMEM footprint per input buffer = bm * 128 * itemsize (N lane-pads to 128);
    # keep the double-buffered input under ~8 MiB (safe on v5e/v6e/v7x defaults).
    per_row_vmem = 128 * itemsize
    bm_vmem_cap = max(1024, ((8 << 20) // (2 * per_row_vmem)) // 1024 * 1024)
    # Aim for >= 2 grid steps when the problem is big enough (v7x megacore).
    bm_split = max(1024, _round_up(-(-M // 2), 1024))
    bm = min(bm_vmem_cap, bm_split)

    if M < bm:
        # Tiny input: single block; pad rows so block <= array. Copy is <= bm*N
        # elements, negligible. (Large M never takes this path: no full-tensor pad.)
        x = jnp.pad(x, ((0, bm - M), (0, 0)))
        m_rows = bm
    else:
        # Last block may be partial: undefined trailing rows only produce output
        # rows >= M, which are sliced off below. No cross-row combining.
        m_rows = M

    nblk = -(-m_rows // bm)           # cdiv
    rows_out = nblk * (bm // 128)     # output sized to whole blocks: no partial writes

    out = pl.pallas_call(
        _vdn_kernel,
        out_shape=jax.ShapeDtypeStruct((rows_out, 128), dtype),
        grid_spec=pltpu.PrefetchScalarGridSpec(
            num_scalar_prefetch=0,
            grid=(nblk,),
            in_specs=[pl.BlockSpec((bm, N), lambda i: (i, 0))],
            out_specs=pl.BlockSpec((bm // 128, 128), lambda i: (i, 0)),
        ),
        compiler_params=pltpu.CompilerParams(
            # Independent row tiles: shardable across the 2 TensorCores on v7x.
            dimension_semantics=("parallel",),
        ),
    )(x)

    # Free reshapes + tiny slice: restore (B, T, 1).
    return out.reshape(-1)[:M].reshape(B, T, 1)


if __name__ == "__main__":
    key = jax.random.PRNGKey(0)

    # Test 1: canonical small shape (batch=2, episode_len=8, n_agents=4), f32.
    q1 = jax.random.normal(key, (2, 8, 4), dtype=jnp.float32)
    out1 = jax.block_until_ready(vdn_net(q1))
    ref1 = jnp.sum(q1, axis=2, keepdims=True)
    assert out1.shape == (2, 8, 1), out1.shape
    assert jnp.allclose(out1, ref1, atol=1e-6, rtol=1e-6)

    # Test 2: odd tiny shape -> single padded block.
    q2 = jax.random.normal(jax.random.PRNGKey(1), (5, 37, 3), dtype=jnp.float32)
    out2 = jax.block_until_ready(vdn_net(q2))
    ref2 = jnp.sum(q2, axis=2, keepdims=True)
    assert out2.shape == (5, 37, 1), out2.shape
    assert jnp.allclose(out2, ref2, atol=1e-6, rtol=1e-6)

    # Test 3: bf16 input with f32 accumulation inside the kernel.
    q3 = jax.random.normal(jax.random.PRNGKey(2), (4, 50, 7), dtype=jnp.bfloat16)
    out3 = jax.block_until_ready(vdn_net(q3))
    ref3 = jnp.sum(q3.astype(jnp.float32), axis=2, keepdims=True)
    assert out3.shape == (4, 50, 1), out3.shape
    assert out3.dtype == jnp.bfloat16
    assert jnp.allclose(out3.astype(jnp.float32), ref3, atol=1e-1, rtol=2e-2)

    # Test 4: multi-block grid with a partial (unpadded) last block.
    q4 = jax.random.normal(jax.random.PRNGKey(3), (3, 700, 4), dtype=jnp.float32)
    out4 = jax.block_until_ready(vdn_net(q4))
    ref4 = jnp.sum(q4, axis=2, keepdims=True)
    assert out4.shape == (3, 700, 1), out4.shape
    assert jnp.allclose(out4, ref4, atol=1e-5, rtol=1e-5)

    print("KERNEL_OK")
</pallas_src>

<mosaic_0001>
module attributes {stable_mosaic.version = 11 : i64} {
  func.func @_vdn_kernel(%arg0: i32, %arg1: memref<1024x4xf32, #tpu.memory_space<vmem>>, %arg2: memref<8x128xf32, #tpu.memory_space<vmem>>) attributes {dimension_semantics = [#tpu.dimension_semantics<parallel>], iteration_bounds = array<i64: 1>, scalar_prefetch = 0 : i64, scratch_operands = 0 : i64, tpu.core_type = #tpu.core_type<tc>, window_params = [{transform_indices = @transform_0, window_bounds = array<i64: 1024, 4>}, {transform_indices = @transform_1, window_bounds = array<i64: 8, 128>}]} {
    %c0 = arith.constant 0 : index
    %c0_0 = arith.constant 0 : index
    %0 = vector.load %arg1[%c0, %c0_0] : memref<1024x4xf32, #tpu.memory_space<vmem>>, vector<1024x4xf32>
    %1 = vector.shape_cast %0 : vector<1024x4xf32> to vector<8x128x4xf32>
    %cst = arith.constant dense<0.000000e+00> : vector<8x128xf32>
    %2 = vector.multi_reduction <add>, %1, %cst [2] : vector<8x128x4xf32> to vector<8x128xf32>
    %c0_1 = arith.constant 0 : index
    %c0_2 = arith.constant 0 : index
    %3 = vector.load %arg2[%c0_1, %c0_2] : memref<8x128xf32, #tpu.memory_space<vmem>>, vector<8x128xf32>
    tpu.vector_store %arg2[%c0_1, %c0_2], %2 {strides = array<i32>} : memref<8x128xf32, #tpu.memory_space<vmem>>, vector<8x128xf32>,
    return
  }
  func.func @transform_0(%arg0: i32) -> (i32, i32) {
    %c0_i32 = arith.constant 0 : i32
    %c0_i32_0 = arith.constant 0 : i32
    return %arg0, %c0_i32 : i32, i32
  }
  func.func @transform_1(%arg0: i32) -> (i32, i32) {
    %c0_i32 = arith.constant 0 : i32
    %c0_i32_0 = arith.constant 0 : i32
    return %arg0, %c0_i32 : i32, i32
  }
}

</mosaic_0001>

<bundles_post_ra>
// kernel: vdn_net.1
= control target key start
LH: loop header
LB: loop body
LE: loop exit
PB: predicated region body
PF: predicated region fallthrough
CT: control target
= control target key end

     0   :  { %vm136_vm0 = vcmask 31744   ;;  %vm660_vm1 = vcmask 130112   ;;  %vm667_vm2 = vcmask 195712   ;;  %vm674_vm3 = vcmask 261312   ;;  %s2221_s0 = inlined_call_operand.vmem [shape: f32[1024,4], index: 0, kind: input, shape index: {}]   ;;  %s2222_s1 = inlined_call_operand.vmem [shape: f32[8,128], index: 1, kind: output, shape index: {}]  }
   0x1   :  { %v10_v0 = vld [vmem:[%s2221_s0 + $0x10] sm:$0xff]  ;;  %v8_v1 = vld [vmem:[%s2221_s0] sm:$0xff]  ;;  %v11_v2 = vld [vmem:[%s2221_s0 + $0x18] sm:$0xff]  ;;  %vm681_vm4 = vcmask 326912   ;;  %vm688_vm5 = vcmask 392512   ;;  %vm695_vm6 = vcmask 458112  }
   0x2   :  { %v143_v3 = vsel %vm136_vm0, %v10_v0, 0.0  ;;  %v137_v4 = vsel %vm136_vm0, %v8_v1, 0.0  ;;  %v9_v5 = vld [vmem:[%s2221_s0 + $0x8] sm:$0xff]  ;;  %v146_v6 = vsel %vm136_vm0, %v11_v2, 0.0  ;;  %v12_v9 = vld [vmem:[%s2221_s0 + $0x20] sm:$0xff]  ;;  %v15_v12 = vld [vmem:[%s2221_s0 + $0x38] sm:$0xff] }
   0x3   :  { %144 = vadd.xlane.f32.xlu1 %v143_v3  ;;  %138 = vadd.xlane.f32.xlu0 %v137_v4  ;;  %v140_v7 = vsel %vm136_vm0, %v9_v5, 0.0  ;;  %v13_v8 = vld [vmem:[%s2221_s0 + $0x28] sm:$0xff]  ;;  %v149_v11 = vsel %vm136_vm0, %v12_v9, 0.0  ;;  %v14_v13 = vld [vmem:[%s2221_s0 + $0x30] sm:$0xff]  ;;  %v158_v14 = vsel %vm136_vm0, %v15_v12, 0.0  ;;  %v16_v17 = vld [vmem:[%s2221_s0 + $0x40] sm:$0xff] }
   0x4   :  { %v152_v10 = vsel %vm136_vm0, %v13_v8, 0.0  ;;  %v155_v15 = vsel %vm136_vm0, %v14_v13, 0.0  ;;  %v17_v16 = vld [vmem:[%s2221_s0 + $0x48] sm:$0xff]  ;;  %v161_v19 = vsel %vm136_vm0, %v16_v17, 0.0  ;;  %v19_v20 = vld [vmem:[%s2221_s0 + $0x58] sm:$0xff]  ;;  %v18_v21 = vld [vmem:[%s2221_s0 + $0x50] sm:$0xff] }
   0x5   :  { %v164_v18 = vsel %vm136_vm0, %v17_v16, 0.0  ;;  %v170_v22 = vsel %vm136_vm0, %v19_v20, 0.0  ;;  %v167_v23 = vsel %vm136_vm0, %v18_v21, 0.0  ;;  %v21_v24 = vld [vmem:[%s2221_s0 + $0x68] sm:$0xff]  ;;  %v20_v25 = vld [vmem:[%s2221_s0 + $0x60] sm:$0xff]  ;;  %v23_v28 = vld [vmem:[%s2221_s0 + $0x78] sm:$0xff] }
   0x6   :  { %v176_v26 = vsel %vm136_vm0, %v21_v24, 0.0  ;;  %v173_v27 = vsel %vm136_vm0, %v20_v25, 0.0  ;;  %v22_v29 = vld [vmem:[%s2221_s0 + $0x70] sm:$0xff]  ;;  %v182_v30 = vsel %vm136_vm0, %v23_v28, 0.0  ;;  %v25_v32 = vld [vmem:[%s2221_s0 + $0x88] sm:$0xff]  ;;  %v24_v33 = vld [vmem:[%s2221_s0 + $0x80] sm:$0xff] }
   0x7   :  { %147 = vadd.xlane.f32.xlu1 %v146_v6  ;;  %141 = vadd.xlane.f32.xlu0 %v140_v7  ;;  %v179_v31 = vsel %vm136_vm0, %v22_v29, 0.0  ;;  %v188_v34 = vsel %vm136_vm0, %v25_v32, 0.0  ;;  %v185_v35 = vsel %vm136_vm0, %v24_v33, 0.0  ;;  %v27_v36 = vld [vmem:[%s2221_s0 + $0x98] sm:$0xff]  ;;  %v26_v37 = vld [vmem:[%s2221_s0 + $0x90] sm:$0xff]  ;;  %v29_v40 = vld [vmem:[%s2221_s0 + $0xa8] sm:$0xff] }
   0x8   :  { %v194_v38 = vsel %vm136_vm0, %v27_v36, 0.0  ;;  %v191_v39 = vsel %vm136_vm0, %v26_v37, 0.0  ;;  %v28_v41 = vld [vmem:[%s2221_s0 + $0xa0] sm:$0xff]  ;;  %v200_v42 = vsel %vm136_vm0, %v29_v40, 0.0  ;;  %v31_v44 = vld [vmem:[%s2221_s0 + $0xb8] sm:$0xff]  ;;  %v30_v45 = vld [vmem:[%s2221_s0 + $0xb0] sm:$0xff] }
   0x9   :  { %v197_v43 = vsel %vm136_vm0, %v28_v41, 0.0  ;;  %v206_v46 = vsel %vm136_vm0, %v31_v44, 0.0  ;;  %v203_v47 = vsel %vm136_vm0, %v30_v45, 0.0  ;;  %v33_v48 = vld [vmem:[%s2221_s0 + $0xc8] sm:$0xff]  ;;  %v32_v49 = vld [vmem:[%s2221_s0 + $0xc0] sm:$0xff]  ;;  %v35_v52 = vld [vmem:[%s2221_s0 + $0xd8] sm:$0xff] }
   0xa   :  { %v212_v50 = vsel %vm136_vm0, %v33_v48, 0.0  ;;  %v209_v51 = vsel %vm136_vm0, %v32_v49, 0.0  ;;  %v34_v53 = vld [vmem:[%s2221_s0 + $0xd0] sm:$0xff]  ;;  %v218_v54 = vsel %vm136_vm0, %v35_v52, 0.0  ;;  %v37_v56 = vld [vmem:[%s2221_s0 + $0xe8] sm:$0xff]  ;;  %v36_v57 = vld [vmem:[%s2221_s0 + $0xe0] sm:$0xff] }
   0xb   :  { %153 = vadd.xlane.f32.xlu1 %v152_v10  ;;  %150 = vadd.xlane.f32.xlu0 %v149_v11  ;;  %v215_v55 = vsel %vm136_vm0, %v34_v53, 0.0  ;;  %v224_v58 = vsel %vm136_vm0, %v37_v56, 0.0  ;;  %v221_v59 = vsel %vm136_vm0, %v36_v57, 0.0  ;;  %v39_v60 = vld [vmem:[%s2221_s0 + $0xf8] sm:$0xff]  ;;  %v38_v61 = vld [vmem:[%s2221_s0 + $0xf0] sm:$0xff]  ;;  %v41_v0 = vld [vmem:[%s2221_s0 + $0x108] sm:$0xff] }
   0xc   :  { %v230_v62 = vsel %vm136_vm0, %v39_v60, 0.0  ;;  %v227_v63 = vsel %vm136_vm0, %v38_v61, 0.0  ;;  %v40_v1 = vld [vmem:[%s2221_s0 + $0x100] sm:$0xff]  ;;  %v236_v2 = vsel %vm136_vm0, %v41_v0, 0.0  ;;  %v43_v4 = vld [vmem:[%s2221_s0 + $0x118] sm:$0xff]  ;;  %v42_v5 = vld [vmem:[%s2221_s0 + $0x110] sm:$0xff] }
   0xd   :  { %v233_v3 = vsel %vm136_vm0, %v40_v1, 0.0  ;;  %v242_v6 = vsel %vm136_vm0, %v43_v4, 0.0  ;;  %v239_v7 = vsel %vm136_vm0, %v42_v5, 0.0  ;;  %v45_v8 = vld [vmem:[%s2221_s0 + $0x128] sm:$0xff]  ;;  %v44_v9 = vld [vmem:[%s2221_s0 + $0x120] sm:$0xff]  ;;  %v47_v12 = vld [vmem:[%s2221_s0 + $0x138] sm:$0xff] }
   0xe   :  { %v248_v10 = vsel %vm136_vm0, %v45_v8, 0.0  ;;  %v245_v11 = vsel %vm136_vm0, %v44_v9, 0.0  ;;  %v46_v13 = vld [vmem:[%s2221_s0 + $0x130] sm:$0xff]  ;;  %v49_v16 = vld [vmem:[%s2221_s0 + $0x148] sm:$0xff]  ;;  %v48_v17 = vld [vmem:[%s2221_s0 + $0x140] sm:$0xff]  ;;  %vm702_vm7 = vcmask 523712  }
   0xf   :  { %159 = vadd.xlane.f32.xlu1 %v158_v14  ;;  %156 = vadd.xlane.f32.xlu0 %v155_v15  ;;  %v254_v14 = vsel %vm136_vm0, %v47_v12, 0.0  ;;  %v251_v15 = vsel %vm136_vm0, %v46_v13, 0.0  ;;  %v51_v20 = vld [vmem:[%s2221_s0 + $0x158] sm:$0xff]  ;;  %v50_v21 = vld [vmem:[%s2221_s0 + $0x150] sm:$0xff]  ;;  %v53_v24 = vld [vmem:[%s2221_s0 + $0x168] sm:$0xff]  ;;  %vm709_vm8 = vcmask 589312  }
  0x10   :  { %v52_v25 = vld [vmem:[%s2221_s0 + $0x160] sm:$0xff]  ;;  %v55_v28 = vld [vmem:[%s2221_s0 + $0x178] sm:$0xff]  ;;  %v54_v29 = vld [vmem:[%s2221_s0 + $0x170] sm:$0xff]  ;;  %vm716_vm9 = vcmask 654912   ;;  %vm723_vm10 = vcmask 720512   ;;  %vm730_vm11 = vcmask 786112  }
  0x11   :  { %v57_v32 = vld [vmem:[%s2221_s0 + $0x188] sm:$0xff]  ;;  %v56_v33 = vld [vmem:[%s2221_s0 + $0x180] sm:$0xff]  ;;  %v59_v36 = vld [vmem:[%s2221_s0 + $0x198] sm:$0xff]  ;;  %vm2223_vm12 = vcmask 851712   ;;  %vm744_vm13 = vcmask 917312   ;;  %vm751_vm14 = vcmask 982912  }
  0x12   :  { %v58_v37 = vld [vmem:[%s2221_s0 + $0x190] sm:$0xff]  ;;  %v61_v40 = vld [vmem:[%s2221_s0 + $0x1a8] sm:$0xff]  ;;  %v60_v41 = vld [vmem:[%s2221_s0 + $0x1a0] sm:$0xff]  ;;  %vm758_vm15 = vcmask 1048512  }
  0x13   :  { %165 = vadd.xlane.f32.xlu1 %v164_v18  ;;  %162 = vadd.xlane.f32.xlu0 %v161_v19  ;;  %v260_v18 = vsel %vm136_vm0, %v49_v16, 0.0  ;;  %v257_v19 = vsel %vm136_vm0, %v48_v17, 0.0  ;;  %v63_v44 = vld [vmem:[%s2221_s0 + $0x1b8] sm:$0xff]  ;;  %v62_v45 = vld [vmem:[%s2221_s0 + $0x1b0] sm:$0xff]  ;;  %v65_v48 = vld [vmem:[%s2221_s0 + $0x1c8] sm:$0xff] }
  0x14   :  { %v64_v49 = vld [vmem:[%s2221_s0 + $0x1c0] sm:$0xff]  ;;  %v67_v52 = vld [vmem:[%s2221_s0 + $0x1d8] sm:$0xff]  ;;  %v66_v53 = vld [vmem:[%s2221_s0 + $0x1d0] sm:$0xff] }
  0x15   :  { %v69_v56 = vld [vmem:[%s2221_s0 + $0x1e8] sm:$0xff]  ;;  %v68_v57 = vld [vmem:[%s2221_s0 + $0x1e0] sm:$0xff]  ;;  %v71_v60 = vld [vmem:[%s2221_s0 + $0x1f8] sm:$0xff] }
  0x16   :  { %v70_v61 = vld [vmem:[%s2221_s0 + $0x1f0] sm:$0xff]  ;;  %v73_v0 = vld [vmem:[%s2221_s0 + $0x208] sm:$0xff]  ;;  %v72_v1 = vld [vmem:[%s2221_s0 + $0x200] sm:$0xff] }
  0x17   :  { %171 = vadd.xlane.f32.xlu1 %v170_v22  ;;  %168 = vadd.xlane.f32.xlu0 %v167_v23  ;;  %v266_v22 = vsel %vm136_vm0, %v51_v20, 0.0  ;;  %v263_v23 = vsel %vm136_vm0, %v50_v21, 0.0  ;;  %v75_v4 = vld [vmem:[%s2221_s0 + $0x218] sm:$0xff]  ;;  %v74_v5 = vld [vmem:[%s2221_s0 + $0x210] sm:$0xff]  ;;  %v77_v9 = vld [vmem:[%s2221_s0 + $0x228] sm:$0xff] }
  0x18   :  { %v335_v8 = vsel %vm136_vm0, %v74_v5, 0.0  ;;  %v344_v12 = vsel %vm136_vm0, %v77_v9, 0.0  ;;  %v78_v16 = vld [vmem:[%s2221_s0 + $0x230] sm:$0xff] }
  0x19   :  { %v86_v5 = vld [vmem:[%s2221_s0 + $0x270] sm:$0xff] }
  0x1b   :  { %177 = vadd.xlane.f32.xlu1 %v176_v26  ;;  %174 = vadd.xlane.f32.xlu0 %v173_v27  ;;  %v272_v26 = vsel %vm136_vm0, %v53_v24, 0.0  ;;  %v269_v27 = vsel %vm136_vm0, %v52_v25, 0.0  ;;  %v81_v24 = vld [vmem:[%s2221_s0 + $0x248] sm:$0xff] }
  0x1f   :  { %183 = vadd.xlane.f32.xlu1 %v182_v30  ;;  %180 = vadd.xlane.f32.xlu0 %v179_v31  ;;  %v278_v30 = vsel %vm136_vm0, %v55_v28, 0.0  ;;  %v275_v31 = vsel %vm136_vm0, %v54_v29, 0.0  ;;  %v80_v29 = vld [vmem:[%s2221_s0 + $0x240] sm:$0xff] }
  0x23   :  { %189 = vadd.xlane.f32.xlu1 %v188_v34  ;;  %186 = vadd.xlane.f32.xlu0 %v185_v35  ;;  %v284_v34 = vsel %vm136_vm0, %v57_v32, 0.0  ;;  %v281_v35 = vsel %vm136_vm0, %v56_v33, 0.0  ;;  %v356_v32 = vsel %vm136_vm0, %v81_v24, 0.0 }
  0x27   :  { %195 = vadd.xlane.f32.xlu1 %v194_v38  ;;  %192 = vadd.xlane.f32.xlu0 %v191_v39  ;;  %v290_v38 = vsel %vm136_vm0, %v59_v36, 0.0  ;;  %v287_v39 = vsel %vm136_vm0, %v58_v37, 0.0  ;;  %v83_v37 = vld [vmem:[%s2221_s0 + $0x258] sm:$0xff] }
  0x2b   :  { %201 = vadd.xlane.f32.xlu1 %v200_v42  ;;  %198 = vadd.xlane.f32.xlu0 %v197_v43  ;;  %v296_v42 = vsel %vm136_vm0, %v61_v40, 0.0  ;;  %v293_v43 = vsel %vm136_vm0, %v60_v41, 0.0 }
  0x2f   :  { %207 = vadd.xlane.f32.xlu1 %v206_v46  ;;  %204 = vadd.xlane.f32.xlu0 %v203_v47  ;;  %v302_v46 = vsel %vm136_vm0, %v63_v44, 0.0  ;;  %v299_v47 = vsel %vm136_vm0, %v62_v45, 0.0 }
  0x33   :  { %213 = vadd.xlane.f32.xlu1 %v212_v50  ;;  %210 = vadd.xlane.f32.xlu0 %v209_v51  ;;  %v308_v50 = vsel %vm136_vm0, %v65_v48, 0.0  ;;  %v305_v51 = vsel %vm136_vm0, %v64_v49, 0.0 }
  0x37   :  { %219 = vadd.xlane.f32.xlu1 %v218_v54  ;;  %216 = vadd.xlane.f32.xlu0 %v215_v55  ;;  %v314_v54 = vsel %vm136_vm0, %v67_v52, 0.0  ;;  %v311_v55 = vsel %vm136_vm0, %v66_v53, 0.0 }
  0x3b   :  { %225 = vadd.xlane.f32.xlu1 %v224_v58  ;;  %222 = vadd.xlane.f32.xlu0 %v221_v59  ;;  %v320_v58 = vsel %vm136_vm0, %v69_v56, 0.0  ;;  %v317_v59 = vsel %vm136_vm0, %v68_v57, 0.0 }
  0x3f   :  { %231 = vadd.xlane.f32.xlu1 %v230_v62  ;;  %228 = vadd.xlane.f32.xlu0 %v227_v63  ;;  %v326_v62 = vsel %vm136_vm0, %v71_v60, 0.0  ;;  %v323_v63 = vsel %vm136_vm0, %v70_v61, 0.0 }
  0x43   :  { %237 = vadd.xlane.f32.xlu1 %v236_v2  ;;  %234 = vadd.xlane.f32.xlu0 %v233_v3  ;;  %v332_v2 = vsel %vm136_vm0, %v73_v0, 0.0  ;;  %v329_v3 = vsel %vm136_vm0, %v72_v1, 0.0 }
  0x47   :  { %243 = vadd.xlane.f32.xlu1 %v242_v6  ;;  %240 = vadd.xlane.f32.xlu0 %v239_v7  ;;  %v649_v6 = vlaneseq  ;;  %v338_v7 = vsel %vm136_vm0, %v75_v4, 0.0  ;;  %v87_v4 = vld [vmem:[%s2221_s0 + $0x278] sm:$0xff] }
  0x4b   :  { %249 = vadd.xlane.f32.xlu1 %v248_v10  ;;  %246 = vadd.xlane.f32.xlu0 %v245_v11  ;;  %v76_v10 = vld [vmem:[%s2221_s0 + $0x220] sm:$0xff]  ;;  %v1621_v11 = vand.u32 127, %v649_v6 }
  0x4c   :  { %v341_v13 = vsel %vm136_vm0, %v76_v10, 0.0 }
  0x4d   :  { %v669_v17 = vadd.s32 4294967272, %v1621_v11  ;;  %v683_v25 = vadd.s32 4294967256, %v1621_v11  ;;  %v690_v40 = vadd.s32 4294967248, %v1621_v11  ;;  %v711_v56 = vadd.s32 4294967224, %v1621_v11 }
  0x4e   :  { %v704_v60 = vadd.s32 4294967232, %v1621_v11  ;;  %v718_v10 = vadd.s32 4294967216, %v1621_v11 }
  0x4f   :  { %255 = vadd.xlane.f32.xlu1 %v254_v14  ;;  %252 = vadd.xlane.f32.xlu0 %v251_v15  ;;  %v1625_v14 = vshrl.u32 %v649_v6, 7  ;;  %v79_v15 = vld [vmem:[%s2221_s0 + $0x238] sm:$0xff]  ;;  %v725_v6 = vadd.s32 4294967208, %v1621_v11 }
  0x51   :  { %v1662_v36 = vsub.s32 %v683_v25, %v1625_v14  ;;  %v1687_v53 = vsub.s32 %v690_v40, %v1625_v14  ;;  %v1717_v9 = vsub.s32 %v704_v60, %v1625_v14  ;;  %v1737_v25 = vsub.s32 %v718_v10, %v1625_v14 }
  0x53   :  { %261 = vadd.xlane.f32.xlu1 %v260_v18  ;;  %258 = vadd.xlane.f32.xlu0 %v257_v19  ;;  %v655_v18 = vadd.s32 4294967288, %v1621_v11  ;;  %v662_v19 = vadd.s32 4294967280, %v1621_v11 }
  0x55   :  { %v1650_v28 = vsub.s32 %v655_v18, %v1625_v14 }
  0x57   :  { %267 = vadd.xlane.f32.xlu1 %v266_v22  ;;  %264 = vadd.xlane.f32.xlu0 %v263_v23  ;;  %v350_v22 = vsel %vm136_vm0, %v79_v15, 0.0  ;;  %v347_v23 = vsel %vm136_vm0, %v78_v16, 0.0  ;;  %v371_v15 = vsel %vm136_vm0, %v86_v5, 0.0  ;;  %v106_v5 = vld [vmem:[%s2221_s0 + $0x310] sm:$0xff] }
  0x5b   :  { %273 = vadd.xlane.f32.xlu1 %v272_v26  ;;  %270 = vadd.xlane.f32.xlu0 %v269_v27  ;;  %v1644_v26 = vsub.s32 %v1621_v11, %v1625_v14  ;;  %v1647_v27 = vsub.s32 %v669_v17, %v1625_v14 }
  0x5f   :  { %279 = vadd.xlane.f32.xlu1 %v278_v30  ;;  %276 = vadd.xlane.f32.xlu0 %v275_v31  ;;  %v676_v30 = vadd.s32 4294967264, %v1621_v11  ;;  %v1657_v31 = vsub.s32 %v662_v19, %v1625_v14  ;;  %v1725_v19 = vsub.s32 %v725_v6, %v1625_v14 }
  0x61   :  { %v1676_v44 = vsub.s32 %v676_v30, %v1625_v14 }
  0x63   :  { %285 = vadd.xlane.f32.xlu1 %v284_v34  ;;  %282 = vadd.xlane.f32.xlu0 %v281_v35  ;;  %v353_v35 = vsel %vm136_vm0, %v80_v29, 0.0  ;;  %v732_v29 = vadd.s32 4294967200, %v1621_v11 }
  0x67   :  { %291 = vadd.xlane.f32.xlu1 %v290_v38  ;;  %288 = vadd.xlane.f32.xlu0 %v287_v39  ;;  %v82_v38 = vld [vmem:[%s2221_s0 + $0x250] sm:$0xff]  ;;  %v697_v39 = vadd.s32 4294967240, %v1621_v11 }
  0x68   :  { %v359_v48 = vsel %vm136_vm0, %v82_v38, 0.0 }
  0x69   :  { %v1684_v52 = vsub.s32 %v697_v39, %v1625_v14  ;;  %v746_v39 = vadd.s32 4294967184, %v1621_v11 }
  0x6b   :  { %297 = vadd.xlane.f32.xlu1 %v296_v42  ;;  %294 = vadd.xlane.f32.xlu0 %v293_v43 }
  0x6f   :  { %303 = vadd.xlane.f32.xlu1 %v302_v46  ;;  %300 = vadd.xlane.f32.xlu0 %v299_v47  ;;  %v362_v47 = vsel %vm136_vm0, %v83_v37, 0.0 }
  0x73   :  { %309 = vadd.xlane.f32.xlu1 %v308_v50  ;;  %306 = vadd.xlane.f32.xlu0 %v305_v51 }
  0x77   :  { %315 = vadd.xlane.f32.xlu1 %v314_v54  ;;  %312 = vadd.xlane.f32.xlu0 %v311_v55  ;;  %v85_v54 = vld [vmem:[%s2221_s0 + $0x268] sm:$0xff]  ;;  %v84_v55 = vld [vmem:[%s2221_s0 + $0x260] sm:$0xff] }
  0x7b   :  { %321 = vadd.xlane.f32.xlu1 %v320_v58  ;;  %318 = vadd.xlane.f32.xlu0 %v317_v59 }
  0x7f   :  { %327 = vadd.xlane.f32.xlu1 %v326_v62  ;;  %324 = vadd.xlane.f32.xlu0 %v323_v63  ;;  %v368_v62 = vsel %vm136_vm0, %v85_v54, 0.0  ;;  %v365_v63 = vsel %vm136_vm0, %v84_v55, 0.0 }
  0x83   :  { %333 = vadd.xlane.f32.xlu1 %v332_v2  ;;  %330 = vadd.xlane.f32.xlu0 %v329_v3  ;;  %v1705_v3 = vsub.s32 %v711_v56, %v1625_v14 }
  0x87   :  { %339 = vadd.xlane.f32.xlu1 %v338_v7  ;;  %336 = vadd.xlane.f32.xlu0 %v335_v8 }
  0x8b   :  { %345 = vadd.xlane.f32.xlu1 %v344_v12  ;;  %342 = vadd.xlane.f32.xlu0 %v341_v13  ;;  %v374_v13 = vsel %vm136_vm0, %v87_v4, 0.0  ;;  %v120_v4 = vld [vmem:[%s2221_s0 + $0x380] sm:$0xff] }
  0x8c   :  { %v145_v20 = vpop.xlane.xlu1 %144  ;;  %v139_v21 = vpop.xlane.xlu0 %138 }
  0x8d   :  { %v654_v41 = vrot.slane %v139_v21, %v1644_v26  ;;  %v666_v45 = vrot.slane %v145_v20, %v1657_v31  ;;  %v89_v20 = vld [vmem:[%s2221_s0 + $0x288] sm:$0xff]  ;;  %v88_v21 = vld [vmem:[%s2221_s0 + $0x280] sm:$0xff] }
  0x8f   :  { %351 = vadd.xlane.f32.xlu1 %v350_v22  ;;  %348 = vadd.xlane.f32.xlu0 %v347_v23  ;;  %v739_v22 = vadd.s32 4294967192, %v1621_v11 }
  0x90   :  { %v148_v33 = vpop.xlane.xlu1 %147  ;;  %v142_v34 = vpop.xlane.xlu0 %141 }
  0x91   :  { %v673_v42 = vrot.slane %v148_v33, %v1647_v27  ;;  %v659_v43 = vrot.slane %v142_v34, %v1650_v28  ;;  %v377_v33 = vsel %vm136_vm0, %v88_v21, 0.0  ;;  %v1745_v38 = vsub.s32 %v739_v22, %v1625_v14 }
  0x93   :  { %v661_v46 = vsel %vm660_vm1, %v659_v43, %v654_v41  ;;  %357 = vadd.xlane.f32.xlu1 %v356_v32  ;;  %354 = vadd.xlane.f32.xlu0 %v353_v35  ;;  %v380_v32 = vsel %vm136_vm0, %v89_v20, 0.0  ;;  %v91_v43 = vld [vmem:[%s2221_s0 + $0x298] sm:$0xff] }
  0x94   :  { %v668_v49 = vsel %vm667_vm2, %v666_v45, %v661_v46  ;;  %v154_v50 = vpop.xlane.xlu1 %153  ;;  %v151_v51 = vpop.xlane.xlu0 %150  ;;  %v90_v45 = vld [vmem:[%s2221_s0 + $0x290] sm:$0xff]  ;;  %v753_v46 = vadd.s32 4294967176, %v1621_v11 }
  0x95   :  { %v687_v57 = vrot.slane %v154_v50, %v1662_v36  ;;  %v675_v58 = vsel %vm674_vm3, %v673_v42, %v668_v49  ;;  %v680_v59 = vrot.slane %v151_v51, %v1676_v44  ;;  %v1751_v42 = vsub.s32 %v732_v29, %v1625_v14 }
  0x96   :  { %v386_v51 = vsel %vm136_vm0, %v91_v43, 0.0  ;;  %v383_v54 = vsel %vm136_vm0, %v90_v45, 0.0  ;;  %v1767_v11 = vsub.s32 %v753_v46, %v1625_v14  ;;  %v108_v46 = vld [vmem:[%s2221_s0 + $0x320] sm:$0xff] }
  0x97   :  { %v682_v61 = vsel %vm681_vm4, %v680_v59, %v675_v58  ;;  %363 = vadd.xlane.f32.xlu1 %v362_v47  ;;  %360 = vadd.xlane.f32.xlu0 %v359_v48  ;;  %v105_v58 = vld [vmem:[%s2221_s0 + $0x308] sm:$0xff]  ;;  %v104_v59 = vld [vmem:[%s2221_s0 + $0x300] sm:$0xff] }
  0x98   :  { %v160_v0 = vpop.xlane.xlu1 %159  ;;  %v689_v1 = vsel %vm688_vm5, %v687_v57, %v682_v61  ;;  %v157_v2 = vpop.xlane.xlu0 %156  ;;  %v1770_v57 = vsub.s32 %v746_v39, %v1625_v14  ;;  %v428_v14 = vsel %vm136_vm0, %v105_v58, 0.0 }
  0x99   :  { %v701_v7 = vrot.slane %v160_v0, %v1684_v52  ;;  %v694_v8 = vrot.slane %v157_v2, %v1687_v53  ;;  %v425_v0 = vsel %vm136_vm0, %v104_v59, 0.0  ;;  %v94_v59 = vld [vmem:[%s2221_s0 + $0x2b0] sm:$0xff] }
  0x9b   :  { %v696_v12 = vsel %vm695_vm6, %v694_v8, %v689_v1  ;;  %369 = vadd.xlane.f32.xlu1 %v368_v62  ;;  %366 = vadd.xlane.f32.xlu0 %v365_v63 }
  0x9c   :  { %v166_v16 = vpop.xlane.xlu1 %165  ;;  %v703_v17 = vsel %vm702_vm7, %v701_v7, %v696_v12  ;;  %v163_v18 = vpop.xlane.xlu0 %162  ;;  %v473_v12 = vsel %vm136_vm0, %v120_v4, 0.0 }
  0x9d   :  { %v715_v23 = vrot.slane %v166_v16, %v1705_v3  ;;  %v708_v24 = vrot.slane %v163_v18, %v1717_v9  ;;  %v121_v18 = vld [vmem:[%s2221_s0 + $0x388] sm:$0xff] }
  0x9f   :  { %v710_v30 = vsel %vm709_vm8, %v708_v24, %v703_v17  ;;  %375 = vadd.xlane.f32.xlu1 %v374_v13  ;;  %372 = vadd.xlane.f32.xlu0 %v371_v15  ;;  %v431_v13 = vsel %vm136_vm0, %v106_v5, 0.0  ;;  %v92_v17 = vld [vmem:[%s2221_s0 + $0x2a0] sm:$0xff]  ;;  %v476_v24 = vsel %vm136_vm0, %v121_v18, 0.0 }
  0xa0   :  { %v172_v34 = vpop.xlane.xlu1 %171  ;;  %v717_v35 = vsel %vm716_vm9, %v715_v23, %v710_v30  ;;  %v169_v37 = vpop.xlane.xlu0 %168  ;;  %v389_v23 = vsel %vm136_vm0, %v92_v17, 0.0  ;;  %v124_v5 = vld [vmem:[%s2221_s0 + $0x3a0] sm:$0xff] }
  0xa1   :  { %v729_v40 = vrot.slane %v172_v34, %v1725_v19  ;;  %v722_v41 = vrot.slane %v169_v37, %v1737_v25 }
  0xa3   :  { %v724_v47 = vsel %vm723_vm10, %v722_v41, %v717_v35  ;;  %381 = vadd.xlane.f32.xlu1 %v380_v32  ;;  %378 = vadd.xlane.f32.xlu0 %v377_v33  ;;  %v122_v32 = vld [vmem:[%s2221_s0 + $0x390] sm:$0xff]  ;;  %v107_v33 = vld [vmem:[%s2221_s0 + $0x318] sm:$0xff] }
  0xa4   :  { %v178_v48 = vpop.xlane.xlu1 %177  ;;  %v731_v49 = vsel %vm730_vm11, %v729_v40, %v724_v47  ;;  %v175_v50 = vpop.xlane.xlu0 %174  ;;  %v479_v40 = vsel %vm136_vm0, %v122_v32, 0.0  ;;  %v434_v41 = vsel %vm136_vm0, %v107_v33, 0.0  ;;  %v93_v47 = vld [vmem:[%s2221_s0 + $0x2a8] sm:$0xff] }
  0xa5   :  { %v743_v55 = vrot.slane %v178_v48, %v1745_v38  ;;  %v736_v56 = vrot.slane %v175_v50, %v1751_v42 }
  0xa7   :  { %v738_v60 = vsel %vm2223_vm12, %v736_v56, %v731_v49  ;;  %387 = vadd.xlane.f32.xlu1 %v386_v51  ;;  %384 = vadd.xlane.f32.xlu0 %v383_v54  ;;  %v437_v54 = vsel %vm136_vm0, %v108_v46, 0.0 }
  0xa8   :  { %v184_v61 = vpop.xlane.xlu1 %183  ;;  %v745_v62 = vsel %vm744_vm13, %v743_v55, %v738_v60  ;;  %v181_v63 = vpop.xlane.xlu0 %180  ;;  %v392_v55 = vsel %vm136_vm0, %v93_v47, 0.0  ;;  %v123_v60 = vld [vmem:[%s2221_s0 + $0x398] sm:$0xff] }
  0xa9   :  { %v757_v1 = vrot.slane %v184_v61, %v1767_v11  ;;  %v750_v2 = vrot.slane %v181_v63, %v1770_v57 }
  0xab   :  { %v752_v6 = vsel %vm751_vm14, %v750_v2, %v745_v62  ;;  %429 = vadd.xlane.f32.xlu1 %v428_v14  ;;  %426 = vadd.xlane.f32.xlu0 %v425_v0  ;;  %v395_v0 = vsel %vm136_vm0, %v94_v59, 0.0 }
  0xac   :  { %v1792_v7 = vsel %vm758_vm15, %v757_v1, %v752_v6  ;;  %v190_v8 = vpop.xlane.xlu1 %189  ;;  %v187_v10 = vpop.xlane.xlu0 %186  ;;  %v482_v1 = vsel %vm136_vm0, %v123_v60, 0.0  ;;  %v109_v6 = vld [vmem:[%s2221_s0 + $0x328] sm:$0xff] }
  0xad   :  { %v767_v15 = vrot.slane %v190_v8, %v1650_v28  ;;  %v763_v16 = vrot.slane %v187_v10, %v1644_v26 }
  0xaf   :  { %v768_v20 = vsel %vm660_vm1, %v767_v15, %v763_v16  ;;  %474 = vadd.xlane.f32.xlu1 %v473_v12  ;;  %432 = vadd.xlane.f32.xlu0 %v431_v13  ;;  %v485_v15 = vsel %vm136_vm0, %v124_v5, 0.0  ;;  %v440_v16 = vsel %vm136_vm0, %v109_v6, 0.0 }
  0xb0   :  { %v196_v21 = vpop.xlane.xlu1 %195  ;;  %v193_v22 = vpop.xlane.xlu0 %192 }
  0xb1   :  { %v777_v29 = vrot.slane %v196_v21, %v1647_v27  ;;  %v772_v30 = vrot.slane %v193_v22, %v1657_v31  ;;  %v95_v21 = vld [vmem:[%s2221_s0 + $0x2b8] sm:$0xff] }
  0xb2   :  { %v398_v32 = vsel %vm136_vm0, %v95_v21, 0.0 }
  0xb3   :  { %v773_v34 = vsel %vm667_vm2, %v772_v30, %v768_v20  ;;  %390 = vadd.xlane.f32.xlu1 %v389_v23  ;;  %477 = vadd.xlane.f32.xlu0 %v476_v24  ;;  %v110_v20 = vld [vmem:[%s2221_s0 + $0x330] sm:$0xff] }
  0xb4   :  { %v202_v35 = vpop.xlane.xlu1 %201  ;;  %v778_v37 = vsel %vm674_vm3, %v777_v29, %v773_v34  ;;  %v199_v39 = vpop.xlane.xlu0 %198  ;;  %v443_v30 = vsel %vm136_vm0, %v110_v20, 0.0 }
  0xb5   :  { %v787_v43 = vrot.slane %v202_v35, %v1662_v36  ;;  %v782_v45 = vrot.slane %v199_v39, %v1676_v44  ;;  %v96_v35 = vld [vmem:[%s2221_s0 + $0x2c0] sm:$0xff] }
  0xb7   :  { %v783_v48 = vsel %vm681_vm4, %v782_v45, %v778_v37  ;;  %480 = vadd.xlane.f32.xlu1 %v479_v40  ;;  %435 = vadd.xlane.f32.xlu0 %v434_v41  ;;  %v125_v37 = vld [vmem:[%s2221_s0 + $0x3a8] sm:$0xff]  ;;  %v401_v45 = vsel %vm136_vm0, %v96_v35, 0.0 }
  0xb8   :  { %v208_v49 = vpop.xlane.xlu1 %207  ;;  %v788_v50 = vsel %vm688_vm5, %v787_v43, %v783_v48  ;;  %v205_v51 = vpop.xlane.xlu0 %204  ;;  %v488_v46 = vsel %vm136_vm0, %v125_v37, 0.0 }
  0xb9   :  { %v797_v56 = vrot.slane %v208_v49, %v1684_v52  ;;  %v792_v58 = vrot.slane %v205_v51, %v1687_v53  ;;  %v126_v49 = vld [vmem:[%s2221_s0 + $0x3b0] sm:$0xff] }
  0xbb   :  { %v793_v61 = vsel %vm695_vm6, %v792_v58, %v788_v50  ;;  %438 = vadd.xlane.f32.xlu1 %v437_v54  ;;  %393 = vadd.xlane.f32.xlu0 %v392_v55  ;;  %v111_v50 = vld [vmem:[%s2221_s0 + $0x338] sm:$0xff]  ;;  %v491_v58 = vsel %vm136_vm0, %v126_v49, 0.0 }
  0xbc   :  { %v214_v62 = vpop.xlane.xlu1 %213  ;;  %v798_v63 = vsel %vm702_vm7, %v797_v56, %v793_v61  ;;  %v211_v14 = vpop.xlane.xlu0 %210  ;;  %v446_v59 = vsel %vm136_vm0, %v111_v50, 0.0 }
  0xbd   :  { %v807_v2 = vrot.slane %v214_v62, %v1705_v3  ;;  %v802_v4 = vrot.slane %v211_v14, %v1717_v9  ;;  %v97_v14 = vld [vmem:[%s2221_s0 + $0x2c8] sm:$0xff] }
  0xbf   :  { %v803_v8 = vsel %vm709_vm8, %v802_v4, %v798_v63  ;;  %396 = vadd.xlane.f32.xlu1 %v395_v0  ;;  %483 = vadd.xlane.f32.xlu0 %v482_v1  ;;  %v112_v63 = vld [vmem:[%s2221_s0 + $0x340] sm:$0xff]  ;;  %v404_v4 = vsel %vm136_vm0, %v97_v14, 0.0 }
  0xc0   :  { %v220_v10 = vpop.xlane.xlu1 %219  ;;  %v808_v12 = vsel %vm716_vm9, %v807_v2, %v803_v8  ;;  %v217_v13 = vpop.xlane.xlu0 %216  ;;  %v98_v8 = vld [vmem:[%s2221_s0 + $0x2d0] sm:$0xff] }
  0xc1   :  { %v817_v17 = vrot.slane %v220_v10, %v1725_v19  ;;  %v812_v18 = vrot.slane %v217_v13, %v1737_v25  ;;  %v127_v10 = vld [vmem:[%s2221_s0 + $0x3b8] sm:$0xff] }
  0xc3   :  { %v813_v22 = vsel %vm723_vm10, %v812_v18, %v808_v12  ;;  %486 = vadd.xlane.f32.xlu1 %v485_v15  ;;  %441 = vadd.xlane.f32.xlu0 %v440_v16  ;;  %v494_v18 = vsel %vm136_vm0, %v127_v10, 0.0 }
  0xc4   :  { %v226_v23 = vpop.xlane.xlu1 %225  ;;  %v818_v24 = vsel %vm730_vm11, %v817_v17, %v813_v22  ;;  %v223_v29 = vpop.xlane.xlu0 %222  ;;  %v407_v17 = vsel %vm136_vm0, %v98_v8, 0.0  ;;  %v128_v22 = vld [vmem:[%s2221_s0 + $0x3c0] sm:$0xff] }
  0xc5   :  { %v827_v33 = vrot.slane %v226_v23, %v1745_v38  ;;  %v822_v34 = vrot.slane %v223_v29, %v1751_v42  ;;  %v113_v23 = vld [vmem:[%s2221_s0 + $0x348] sm:$0xff] }
  0xc7   :  { %v823_v39 = vsel %vm2223_vm12, %v822_v34, %v818_v24  ;;  %444 = vadd.xlane.f32.xlu1 %v443_v30  ;;  %399 = vadd.xlane.f32.xlu0 %v398_v32  ;;  %vm1313_vm12 = vcmask 1041409   ;;  %v452_v34 = vsel %vm136_vm0, %v113_v23, 0.0 }
  0xc8   :  { %v232_v40 = vpop.xlane.xlu1 %231  ;;  %v828_v41 = vsel %vm744_vm13, %v827_v33, %v823_v39  ;;  %v229_v43 = vpop.xlane.xlu0 %228  ;;  %v497_v33 = vsel %vm136_vm0, %v128_v22, 0.0  ;;  %v114_v39 = vld [vmem:[%s2221_s0 + $0x350] sm:$0xff] }
  0xc9   :  { %v837_v47 = vrot.slane %v232_v40, %v1767_v11  ;;  %v832_v48 = vrot.slane %v229_v43, %v1770_v57  ;;  %v99_v40 = vld [vmem:[%s2221_s0 + $0x2d8] sm:$0xff] }
  0xcb   :  { %v833_v51 = vsel %vm751_vm14, %v832_v48, %v828_v41  ;;  %402 = vadd.xlane.f32.xlu1 %v401_v45  ;;  %489 = vadd.xlane.f32.xlu0 %v488_v46  ;;  %v410_v48 = vsel %vm136_vm0, %v99_v40, 0.0 }
  0xcc   :  { %v838_v54 = vsel %vm758_vm15, %v837_v47, %v833_v51  ;;  %v238_v55 = vpop.xlane.xlu1 %237  ;;  %v235_v56 = vpop.xlane.xlu0 %234  ;;  %v455_v47 = vsel %vm136_vm0, %v114_v39, 0.0  ;;  %v100_v51 = vld [vmem:[%s2221_s0 + $0x2e0] sm:$0xff] }
  0xcd   :  { %v1892_v60 = vsel %vm1313_vm12, %v838_v54, %v1792_v7  ;;  %v846_v61 = vrot.slane %v238_v55, %v1650_v28  ;;  %v842_v62 = vrot.slane %v235_v56, %v1644_v26  ;;  %v449_v7 = vsel %vm136_vm0, %v112_v63, 0.0  ;;  %v129_v54 = vld [vmem:[%s2221_s0 + $0x3c8] sm:$0xff] }
  0xce   :  { %vm2224_vm12 = vcmask 851712  }
  0xcf   :  { %v847_v0 = vsel %vm660_vm1, %v846_v61, %v842_v62  ;;  %492 = vadd.xlane.f32.xlu1 %v491_v58  ;;  %447 = vadd.xlane.f32.xlu0 %v446_v59  ;;  %v413_v61 = vsel %vm136_vm0, %v100_v51, 0.0  ;;  %v500_v62 = vsel %vm136_vm0, %v129_v54, 0.0 }
  0xd0   :  { %v244_v1 = vpop.xlane.xlu1 %243  ;;  %v241_v2 = vpop.xlane.xlu0 %240 }
  0xd1   :  { %v856_v5 = vrot.slane %v244_v1, %v1647_v27  ;;  %v851_v6 = vrot.slane %v241_v2, %v1657_v31  ;;  %v115_v1 = vld [vmem:[%s2221_s0 + $0x358] sm:$0xff] }
  0xd2   :  { %v458_v8 = vsel %vm136_vm0, %v115_v1, 0.0 }
  0xd3   :  { %v852_v12 = vsel %vm667_vm2, %v851_v6, %v847_v0  ;;  %450 = vadd.xlane.f32.xlu1 %v449_v7  ;;  %405 = vadd.xlane.f32.xlu0 %v404_v4  ;;  %v130_v0 = vld [vmem:[%s2221_s0 + $0x3d0] sm:$0xff] }
  0xd4   :  { %v250_v13 = vpop.xlane.xlu1 %249  ;;  %v857_v15 = vsel %vm674_vm3, %v856_v5, %v852_v12  ;;  %v247_v16 = vpop.xlane.xlu0 %246  ;;  %v503_v6 = vsel %vm136_vm0, %v130_v0, 0.0 }
  0xd5   :  { %v866_v20 = vrot.slane %v250_v13, %v1662_v36  ;;  %v861_v21 = vrot.slane %v247_v16, %v1676_v44  ;;  %v116_v13 = vld [vmem:[%s2221_s0 + $0x360] sm:$0xff] }
  0xd7   :  { %v862_v24 = vsel %vm681_vm4, %v861_v21, %v857_v15  ;;  %408 = vadd.xlane.f32.xlu1 %v407_v17  ;;  %495 = vadd.xlane.f32.xlu0 %v494_v18  ;;  %v101_v15 = vld [vmem:[%s2221_s0 + $0x2e8] sm:$0xff]  ;;  %v461_v21 = vsel %vm136_vm0, %v116_v13, 0.0 }
  0xd8   :  { %v256_v29 = vpop.xlane.xlu1 %255  ;;  %v867_v30 = vsel %vm688_vm5, %v866_v20, %v862_v24  ;;  %v253_v32 = vpop.xlane.xlu0 %252  ;;  %v416_v22 = vsel %vm136_vm0, %v101_v15, 0.0 }
  0xd9   :  { %v876_v35 = vrot.slane %v256_v29, %v1684_v52  ;;  %v871_v37 = vrot.slane %v253_v32, %v1687_v53  ;;  %v102_v29 = vld [vmem:[%s2221_s0 + $0x2f0] sm:$0xff] }
  0xdb   :  { %v872_v41 = vsel %vm695_vm6, %v871_v37, %v867_v30  ;;  %498 = vadd.xlane.f32.xlu1 %v497_v33  ;;  %453 = vadd.xlane.f32.xlu0 %v452_v34  ;;  %v131_v30 = vld [vmem:[%s2221_s0 + $0x3d8] sm:$0xff]  ;;  %v419_v37 = vsel %vm136_vm0, %v102_v29, 0.0 }
  0xdc   :  { %v262_v43 = vpop.xlane.xlu1 %261  ;;  %v877_v45 = vsel %vm702_vm7, %v876_v35, %v872_v41  ;;  %v259_v46 = vpop.xlane.xlu0 %258  ;;  %v506_v39 = vsel %vm136_vm0, %v131_v30, 0.0 }
  0xdd   :  { %v886_v49 = vrot.slane %v262_v43, %v1705_v3  ;;  %v881_v50 = vrot.slane %v259_v46, %v1717_v9  ;;  %v117_v46 = vld [vmem:[%s2221_s0 + $0x368] sm:$0xff] }
  0xdf   :  { %v882_v55 = vsel %vm709_vm8, %v881_v50, %v877_v45  ;;  %456 = vadd.xlane.f32.xlu1 %v455_v47  ;;  %411 = vadd.xlane.f32.xlu0 %v410_v48  ;;  %v132_v45 = vld [vmem:[%s2221_s0 + $0x3e0] sm:$0xff]  ;;  %v464_v50 = vsel %vm136_vm0, %v117_v46, 0.0 }
  0xe0   :  { %v268_v56 = vpop.xlane.xlu1 %267  ;;  %v887_v58 = vsel %vm716_vm9, %v886_v49, %v882_v55  ;;  %v265_v59 = vpop.xlane.xlu0 %264  ;;  %v118_v55 = vld [vmem:[%s2221_s0 + $0x370] sm:$0xff] }
  0xe1   :  { %v896_v63 = vrot.slane %v268_v56, %v1725_v19  ;;  %v891_v14 = vrot.slane %v265_v59, %v1737_v25  ;;  %v103_v56 = vld [vmem:[%s2221_s0 + $0x2f8] sm:$0xff] }
  0xe3   :  { %v892_v2 = vsel %vm723_vm10, %v891_v14, %v887_v58  ;;  %414 = vadd.xlane.f32.xlu1 %v413_v61  ;;  %501 = vadd.xlane.f32.xlu0 %v500_v62  ;;  %v422_v14 = vsel %vm136_vm0, %v103_v56, 0.0 }
  0xe4   :  { %v274_v7 = vpop.xlane.xlu1 %273  ;;  %v897_v4 = vsel %vm730_vm11, %v896_v63, %v892_v2  ;;  %v271_v5 = vpop.xlane.xlu0 %270  ;;  %v467_v63 = vsel %vm136_vm0, %v118_v55, 0.0  ;;  %v119_v2 = vld [vmem:[%s2221_s0 + $0x378] sm:$0xff] }
  0xe5   :  { %v906_v10 = vrot.slane %v274_v7, %v1745_v38  ;;  %v901_v12 = vrot.slane %v271_v5, %v1751_v42  ;;  %v133_v7 = vld [vmem:[%s2221_s0 + $0x3e8] sm:$0xff] }
  0xe7   :  { %v902_v16 = vsel %vm2224_vm12, %v901_v12, %v897_v4  ;;  %504 = vadd.xlane.f32.xlu1 %v503_v6  ;;  %459 = vadd.xlane.f32.xlu0 %v458_v8  ;;  %vm1315_vm12 = vcmask 1042434   ;;  %v512_v12 = vsel %vm136_vm0, %v133_v7, 0.0 }
  0xe8   :  { %v280_v17 = vpop.xlane.xlu1 %279  ;;  %v907_v18 = vsel %vm744_vm13, %v906_v10, %v902_v16  ;;  %v277_v20 = vpop.xlane.xlu0 %276  ;;  %v470_v10 = vsel %vm136_vm0, %v119_v2, 0.0  ;;  %v134_v16 = vld [vmem:[%s2221_s0 + $0x3f0] sm:$0xff] }
  0xe9   :  { %v916_v23 = vrot.slane %v280_v17, %v1767_v11  ;;  %v911_v24 = vrot.slane %v277_v20, %v1770_v57  ;;  %v135_v17 = vld [vmem:[%s2221_s0 + $0x3f8] sm:$0xff] }
  0xeb   :  { %v912_v32 = vsel %vm751_vm14, %v911_v24, %v907_v18  ;;  %462 = vadd.xlane.f32.xlu1 %v461_v21  ;;  %417 = vadd.xlane.f32.xlu0 %v416_v22  ;;  %v518_v24 = vsel %vm136_vm0, %v135_v17, 0.0 }
  0xec   :  { %v917_v33 = vsel %vm758_vm15, %v916_v23, %v912_v32  ;;  %v286_v34 = vpop.xlane.xlu1 %285  ;;  %v283_v35 = vpop.xlane.xlu0 %282  ;;  %v515_v23 = vsel %vm136_vm0, %v134_v16, 0.0 }
  0xed   :  { %v1990_v40 = vsel %vm1315_vm12, %v917_v33, %v1892_v60  ;;  %v925_v41 = vrot.slane %v286_v34, %v1650_v28  ;;  %v921_v43 = vrot.slane %v283_v35, %v1644_v26  ;;  %v509_v60 = vsel %vm136_vm0, %v132_v45, 0.0 }
  0xee   :  { %vm2225_vm0 = vcmask 851712   ;;  %vm1317_vm12 = vcmask 1043459  }
  0xef   :  { %v926_v47 = vsel %vm660_vm1, %v925_v41, %v921_v43  ;;  %420 = vadd.xlane.f32.xlu1 %v419_v37  ;;  %507 = vadd.xlane.f32.xlu0 %v506_v39 }
  0xf0   :  { %v292_v48 = vpop.xlane.xlu1 %291  ;;  %v289_v49 = vpop.xlane.xlu0 %288 }
  0xf1   :  { %v935_v51 = vrot.slane %v292_v48, %v1647_v27  ;;  %v930_v54 = vrot.slane %v289_v49, %v1657_v31 }
  0xf3   :  { %v931_v58 = vsel %vm667_vm2, %v930_v54, %v926_v47  ;;  %510 = vadd.xlane.f32.xlu1 %v509_v60  ;;  %465 = vadd.xlane.f32.xlu0 %v464_v50 }
  0xf4   :  { %v298_v59 = vpop.xlane.xlu1 %297  ;;  %v936_v61 = vsel %vm674_vm3, %v935_v51, %v931_v58  ;;  %v295_v62 = vpop.xlane.xlu0 %294 }
  0xf5   :  { %v945_v0 = vrot.slane %v298_v59, %v1662_v36  ;;  %v940_v1 = vrot.slane %v295_v62, %v1676_v44 }
  0xf7   :  { %v941_v4 = vsel %vm681_vm4, %v940_v1, %v936_v61  ;;  %468 = vadd.xlane.f32.xlu1 %v467_v63  ;;  %423 = vadd.xlane.f32.xlu0 %v422_v14 }
  0xf8   :  { %v304_v5 = vpop.xlane.xlu1 %303  ;;  %v946_v6 = vsel %vm688_vm5, %v945_v0, %v941_v4  ;;  %v301_v8 = vpop.xlane.xlu0 %300 }
  0xf9   :  { %v955_v13 = vrot.slane %v304_v5, %v1684_v52  ;;  %v950_v15 = vrot.slane %v301_v8, %v1687_v53 }
  0xfb   :  { %v951_v18 = vsel %vm695_vm6, %v950_v15, %v946_v6  ;;  %471 = vadd.xlane.f32.xlu1 %v470_v10  ;;  %513 = vadd.xlane.f32.xlu0 %v512_v12 }
  0xfc   :  { %v310_v20 = vpop.xlane.xlu1 %309  ;;  %v956_v21 = vsel %vm702_vm7, %v955_v13, %v951_v18  ;;  %v307_v22 = vpop.xlane.xlu0 %306 }
  0xfd   :  { %v965_v29 = vrot.slane %v310_v20, %v1705_v3  ;;  %v960_v30 = vrot.slane %v307_v22, %v1717_v9 }
  0xff   :  { %v961_v32 = vsel %vm709_vm8, %v960_v30, %v956_v21  ;;  %516 = vadd.xlane.f32.xlu0 %v515_v23  ;;  %519 = vadd.xlane.f32.xlu1 %v518_v24 }
 0x100   :  { %v316_v33 = vpop.xlane.xlu1 %315  ;;  %v966_v34 = vsel %vm716_vm9, %v965_v29, %v961_v32  ;;  %v313_v35 = vpop.xlane.xlu0 %312 }
 0x101   :  { %v975_v37 = vrot.slane %v316_v33, %v1725_v19  ;;  %v970_v39 = vrot.slane %v313_v35, %v1737_v25 }
 0x103   :  { %v971_v41 = vsel %vm723_vm10, %v970_v39, %v966_v34 }
 0x104   :  { %v322_v43 = vpop.xlane.xlu1 %321  ;;  %v976_v45 = vsel %vm730_vm11, %v975_v37, %v971_v41  ;;  %v319_v46 = vpop.xlane.xlu0 %318 }
 0x105   :  { %v985_v47 = vrot.slane %v322_v43, %v1745_v38  ;;  %v980_v48 = vrot.slane %v319_v46, %v1751_v42 }
 0x107   :  { %v981_v49 = vsel %vm2225_vm0, %v980_v48, %v976_v45 }
 0x108   :  { %v328_v60 = vpop.xlane.xlu1 %327  ;;  %v986_v50 = vsel %vm744_vm13, %v985_v47, %v981_v49  ;;  %v325_v51 = vpop.xlane.xlu0 %324 }
 0x109   :  { %v995_v54 = vrot.slane %v328_v60, %v1767_v11  ;;  %v990_v55 = vrot.slane %v325_v51, %v1770_v57 }
 0x10b   :  { %v991_v56 = vsel %vm751_vm14, %v990_v55, %v986_v50 }
 0x10c   :  { %v996_v58 = vsel %vm758_vm15, %v995_v54, %v991_v56  ;;  %v334_v59 = vpop.xlane.xlu1 %333  ;;  %v331_v61 = vpop.xlane.xlu0 %330 }
 0x10d   :  { %v1318_v62 = vsel %vm1317_vm12, %v996_v58, %v1990_v40  ;;  %v1004_v63 = vrot.slane %v334_v59, %v1650_v28  ;;  %v1000_v14 = vrot.slane %v331_v61, %v1644_v26  ;;  %vm1319_vm12 = vcmask 1044484  }
 0x10f   :  { %v1005_v0 = vsel %vm660_vm1, %v1004_v63, %v1000_v14 }
 0x110   :  { %v340_v1 = vpop.xlane.xlu1 %339  ;;  %v337_v2 = vpop.xlane.xlu0 %336 }
 0x111   :  { %v1014_v7 = vrot.slane %v340_v1, %v1647_v27  ;;  %v1009_v4 = vrot.slane %v337_v2, %v1657_v31 }
 0x113   :  { %v1010_v5 = vsel %vm667_vm2, %v1009_v4, %v1005_v0 }
 0x114   :  { %v346_v6 = vpop.xlane.xlu1 %345  ;;  %v1015_v8 = vsel %vm674_vm3, %v1014_v7, %v1010_v5  ;;  %v343_v10 = vpop.xlane.xlu0 %342 }
 0x115   :  { %v1024_v40 = vrot.slane %v346_v6, %v1662_v36  ;;  %v1019_v12 = vrot.slane %v343_v10, %v1676_v44 }
 0x117   :  { %v1020_v13 = vsel %vm681_vm4, %v1019_v12, %v1015_v8 }
 0x118   :  { %v352_v15 = vpop.xlane.xlu1 %351  ;;  %v1025_v16 = vsel %vm688_vm5, %v1024_v40, %v1020_v13  ;;  %v349_v17 = vpop.xlane.xlu0 %348 }
 0x119   :  { %v1034_v18 = vrot.slane %v352_v15, %v1684_v52  ;;  %v1029_v20 = vrot.slane %v349_v17, %v1687_v53 }
 0x11b   :  { %v1030_v21 = vsel %vm695_vm6, %v1029_v20, %v1025_v16 }
 0x11c   :  { %v358_v22 = vpop.xlane.xlu1 %357  ;;  %v1035_v23 = vsel %vm702_vm7, %v1034_v18, %v1030_v21  ;;  %v355_v24 = vpop.xlane.xlu0 %354 }
 0x11d   :  { %v1044_v29 = vrot.slane %v358_v22, %v1705_v3  ;;  %v1039_v30 = vrot.slane %v355_v24, %v1717_v9 }
 0x11f   :  { %v1040_v32 = vsel %vm709_vm8, %v1039_v30, %v1035_v23 }
 0x120   :  { %v364_v33 = vpop.xlane.xlu1 %363  ;;  %v1045_v34 = vsel %vm716_vm9, %v1044_v29, %v1040_v32  ;;  %v361_v35 = vpop.xlane.xlu0 %360 }
 0x121   :  { %v1054_v37 = vrot.slane %v364_v33, %v1725_v19  ;;  %v1049_v39 = vrot.slane %v361_v35, %v1737_v25 }
 0x123   :  { %v1050_v41 = vsel %vm723_vm10, %v1049_v39, %v1045_v34 }
 0x124   :  { %v370_v43 = vpop.xlane.xlu1 %369  ;;  %v1055_v45 = vsel %vm730_vm11, %v1054_v37, %v1050_v41  ;;  %v367_v46 = vpop.xlane.xlu0 %366 }
 0x125   :  { %v1064_v47 = vrot.slane %v370_v43, %v1745_v38  ;;  %v1059_v48 = vrot.slane %v367_v46, %v1751_v42 }
 0x127   :  { %v1060_v49 = vsel %vm2225_vm0, %v1059_v48, %v1055_v45 }
 0x128   :  { %v376_v60 = vpop.xlane.xlu1 %375  ;;  %v1065_v50 = vsel %vm744_vm13, %v1064_v47, %v1060_v49  ;;  %v373_v51 = vpop.xlane.xlu0 %372 }
 0x129   :  { %v1074_v54 = vrot.slane %v376_v60, %v1767_v11  ;;  %v1069_v55 = vrot.slane %v373_v51, %v1770_v57 }
 0x12b   :  { %v1070_v56 = vsel %vm751_vm14, %v1069_v55, %v1065_v50 }
 0x12c   :  { %v1075_v58 = vsel %vm758_vm15, %v1074_v54, %v1070_v56  ;;  %v382_v59 = vpop.xlane.xlu1 %381  ;;  %v379_v61 = vpop.xlane.xlu0 %378 }
 0x12d   :  { %v1083_v63 = vrot.slane %v382_v59, %v1650_v28  ;;  %v1079_v14 = vrot.slane %v379_v61, %v1644_v26  ;;  %v2089_v0 = vsel %vm1319_vm12, %v1075_v58, %v1318_v62 }
 0x12f   :  { %v1084_v1 = vsel %vm660_vm1, %v1083_v63, %v1079_v14 }
 0x130   :  { %v388_v2 = vpop.xlane.xlu1 %387  ;;  %v385_v7 = vpop.xlane.xlu0 %384 }
 0x131   :  { %v1093_v4 = vrot.slane %v388_v2, %v1647_v27  ;;  %v1088_v5 = vrot.slane %v385_v7, %v1657_v31 }
 0x133   :  { %v1089_v6 = vsel %vm667_vm2, %v1088_v5, %v1084_v1 }
 0x134   :  { %v430_v8 = vpop.xlane.xlu1 %429  ;;  %v427_v10 = vpop.xlane.xlu0 %426  ;;  %v1094_v40 = vsel %vm674_vm3, %v1093_v4, %v1089_v6 }
 0x135   :  { %v1162_v12 = vrot.slane %v430_v8, %v1650_v28  ;;  %v1158_v13 = vrot.slane %v427_v10, %v1644_v26 }
 0x137   :  { %v1163_v62 = vsel %vm660_vm1, %v1162_v12, %v1158_v13 }
 0x138   :  { %v475_v15 = vpop.xlane.xlu1 %474  ;;  %v433_v16 = vpop.xlane.xlu0 %432 }
 0x139   :  { %v1167_v17 = vrot.slane %v433_v16, %v1657_v31  ;;  %v1237_v1 = vrot.slane %v475_v15, %v1644_v26 }
 0x13b   :  { %v1168_v18 = vsel %vm667_vm2, %v1167_v17, %v1163_v62 }
 0x13c   :  { %v391_v20 = vpop.xlane.xlu1 %390  ;;  %v478_v21 = vpop.xlane.xlu0 %477 }
 0x13d   :  { %v1241_v61 = vrot.slane %v478_v21, %v1650_v28  ;;  %v1098_v63 = vrot.slane %v391_v20, %v1676_v44 }
 0x13f   :  { %v1242_v8 = vsel %vm660_vm1, %v1241_v61, %v1237_v1  ;;  %v1099_v12 = vsel %vm681_vm4, %v1098_v63, %v1094_v40  ;;  %vm1321_vm1 = vcmask 1045509  }
 0x140   :  { %v481_v22 = vpop.xlane.xlu1 %480  ;;  %v436_v23 = vpop.xlane.xlu0 %435 }
 0x141   :  { %v1246_v14 = vrot.slane %v481_v22, %v1657_v31  ;;  %v1172_v2 = vrot.slane %v436_v23, %v1647_v27 }
 0x143   :  { %v1247_v31 = vsel %vm667_vm2, %v1246_v14, %v1242_v8  ;;  %v1173_v62 = vsel %vm674_vm3, %v1172_v2, %v1168_v18  ;;  %vm1323_vm2 = vcmask 1046534  }
 0x144   :  { %v439_v24 = vpop.xlane.xlu1 %438  ;;  %v394_v29 = vpop.xlane.xlu0 %393 }
 0x145   :  { %v1177_v5 = vrot.slane %v439_v24, %v1676_v44  ;;  %v1103_v6 = vrot.slane %v394_v29, %v1662_v36 }
 0x147   :  { %v1104_v40 = vsel %vm688_vm5, %v1103_v6, %v1099_v12 }
 0x148   :  { %v397_v30 = vpop.xlane.xlu1 %396  ;;  %v484_v32 = vpop.xlane.xlu0 %483 }
 0x149   :  { %v1108_v10 = vrot.slane %v397_v30, %v1687_v53  ;;  %v1251_v28 = vrot.slane %v484_v32, %v1647_v27  ;;  %v1178_v27 = vsel %vm681_vm4, %v1177_v5, %v1173_v62 }
 0x14b   :  { %v1109_v18 = vsel %vm695_vm6, %v1108_v10, %v1104_v40 }
 0x14c   :  { %v487_v33 = vpop.xlane.xlu1 %486  ;;  %v442_v34 = vpop.xlane.xlu0 %441 }
 0x14d   :  { %v1182_v26 = vrot.slane %v442_v34, %v1662_v36  ;;  %v1256_v15 = vrot.slane %v487_v33, %v1676_v44  ;;  %v1252_v44 = vsel %vm674_vm3, %v1251_v28, %v1247_v31  ;;  %vm2226_vm3 = vmmov %vm2225_vm0 }
 0x14f   :  { %v1183_v30 = vsel %vm688_vm5, %v1182_v26, %v1178_v27  ;;  %v1257_v34 = vsel %vm681_vm4, %v1256_v15, %v1252_v44  ;;  %vm2227_vm4 = vmmov %vm2225_vm0 }
 0x150   :  { %v445_v35 = vpop.xlane.xlu1 %444  ;;  %v400_v37 = vpop.xlane.xlu0 %399 }
 0x151   :  { %v1113_v13 = vrot.slane %v400_v37, %v1684_v52  ;;  %v1187_v16 = vrot.slane %v445_v35, %v1687_v53 }
 0x153   :  { %v1114_v32 = vsel %vm702_vm7, %v1113_v13, %v1109_v18  ;;  %v1188_v35 = vsel %vm695_vm6, %v1187_v16, %v1183_v30 }
 0x154   :  { %v403_v39 = vpop.xlane.xlu1 %402  ;;  %v490_v41 = vpop.xlane.xlu0 %489 }
 0x155   :  { %v1118_v17 = vrot.slane %v403_v39, %v1717_v9  ;;  %v1261_v22 = vrot.slane %v490_v41, %v1662_v36 }
 0x157   :  { %v1119_v37 = vsel %vm709_vm8, %v1118_v17, %v1114_v32 }
 0x158   :  { %v2101_v43 = vpop.xlane.xlu1 %492  ;;  %v448_v45 = vpop.xlane.xlu0 %447 }
 0x159   :  { %v1192_v24 = vrot.slane %v448_v45, %v1684_v52  ;;  %v1266_v1 = vrot.slane %v2101_v43, %v1687_v53 }
 0x15c   :  { %v2103_v46 = vpop.xlane.xlu1 %450  ;;  %v406_v47 = vpop.xlane.xlu0 %405 }
 0x15d   :  { %v1123_v23 = vrot.slane %v406_v47, %v1705_v3  ;;  %v1197_v33 = vrot.slane %v2103_v46, %v1717_v9  ;;  %v1262_v47 = vsel %vm688_vm5, %v1261_v22, %v1257_v34  ;;  %vm2228_vm5 = vmmov %vm2225_vm0 }
 0x160   :  { %v409_v48 = vpop.xlane.xlu1 %408  ;;  %v2105_v49 = vpop.xlane.xlu0 %495 }
 0x161   :  { %v1128_v29 = vrot.slane %v409_v48, %v1737_v25  ;;  %v1124_v48 = vsel %vm716_vm9, %v1123_v23, %v1119_v37 }
 0x163   :  { %v1129_v63 = vsel %vm723_vm10, %v1128_v29, %v1124_v48 }
 0x164   :  { %v2107_v60 = vpop.xlane.xlu1 %498  ;;  %v2109_v50 = vpop.xlane.xlu0 %453 }
 0x165   :  { %v1202_v61 = vrot.slane %v2109_v50, %v1705_v3  ;;  %v1276_v6 = vrot.slane %v2107_v60, %v1717_v9 }
 0x168   :  { %v2111_v51 = vpop.xlane.xlu1 %456  ;;  %v412_v54 = vpop.xlane.xlu0 %411 }
 0x169   :  { %v1133_v36 = vrot.slane %v412_v54, %v1725_v19  ;;  %v1193_v54 = vsel %vm702_vm7, %v1192_v24, %v1188_v35  ;;  %v1207_v14 = vrot.slane %v2111_v51, %v1737_v25 }
 0x16a   :  { %v1198_v2 = vsel %vm709_vm8, %v1197_v33, %v1193_v54 }
 0x16b   :  { %v1134_v5 = vsel %vm730_vm11, %v1133_v36, %v1129_v63  ;;  %v1203_v43 = vsel %vm716_vm9, %v1202_v61, %v1198_v2 }
 0x16c   :  { %v415_v55 = vpop.xlane.xlu1 %414  ;;  %v2113_v56 = vpop.xlane.xlu0 %501 }
 0x16d   :  { %v1138_v39 = vrot.slane %v415_v55, %v1751_v42  ;;  %v1281_v9 = vrot.slane %v2113_v56, %v1705_v3 }
 0x16f   :  { %v1139_v51 = vsel %vm2226_vm3, %v1138_v39, %v1134_v5 }
 0x170   :  { %v2115_v58 = vpop.xlane.xlu1 %504  ;;  %v2117_v59 = vpop.xlane.xlu0 %459 }
 0x171   :  { %v1212_v50 = vrot.slane %v2117_v59, %v1725_v19  ;;  %v1286_v31 = vrot.slane %v2115_v58, %v1737_v25 }
 0x174   :  { %v2124_v7 = vpop.xlane.xlu1 %462  ;;  %v418_v4 = vpop.xlane.xlu0 %417 }
 0x175   :  { %v1143_v46 = vrot.slane %v418_v4, %v1745_v38  ;;  %v1271_v4 = vrot.slane %v2105_v49, %v1684_v52  ;;  %v1217_v8 = vrot.slane %v2124_v7, %v1751_v42  ;;  %v1208_v52 = vsel %vm723_vm10, %v1207_v14, %v1203_v43 }
 0x176   :  { %v1267_v7 = vsel %vm695_vm6, %v1266_v1, %v1262_v47  ;;  %v1213_v26 = vsel %vm730_vm11, %v1212_v50, %v1208_v52  ;;  %vm1325_vm6 = vcmask 1047559  }
 0x177   :  { %v1144_v28 = vsel %vm744_vm13, %v1143_v46, %v1139_v51  ;;  %v1272_v62 = vsel %vm702_vm7, %v1271_v4, %v1267_v7  ;;  %v1218_v15 = vsel %vm2227_vm4, %v1217_v8, %v1213_v26 }
 0x178   :  { %v421_v20 = vpop.xlane.xlu1 %420  ;;  %v2139_v21 = vpop.xlane.xlu0 %507 }
 0x179   :  { %v1148_v55 = vrot.slane %v421_v20, %v1770_v57  ;;  %v1291_v3 = vrot.slane %v2139_v21, %v1725_v19  ;;  %v1277_v20 = vsel %vm709_vm8, %v1276_v6, %v1272_v62 }
 0x17a   :  { %v1282_v40 = vsel %vm716_vm9, %v1281_v9, %v1277_v20 }
 0x17b   :  { %v1149_v49 = vsel %vm751_vm14, %v1148_v55, %v1144_v28  ;;  %v1287_v19 = vsel %vm723_vm10, %v1286_v31, %v1282_v40 }
 0x17c   :  { %v511_v41 = vpop.xlane.xlu1 %510  ;;  %v466_v45 = vpop.xlane.xlu0 %465  ;;  %v1292_v21 = vsel %vm730_vm11, %v1291_v3, %v1287_v19 }
 0x17d   :  { %v1222_v12 = vrot.slane %v466_v45, %v1745_v38  ;;  %v1296_v25 = vrot.slane %v511_v41, %v1751_v42 }
 0x17f   :  { %v1223_v58 = vsel %vm744_vm13, %v1222_v12, %v1218_v15  ;;  %v1297_v24 = vsel %vm2228_vm5, %v1296_v25, %v1292_v21 }
 0x180   :  { %v469_v10 = vpop.xlane.xlu1 %468  ;;  %v424_v53 = vpop.xlane.xlu0 %423 }
 0x181   :  { %v1153_v59 = vrot.slane %v424_v53, %v1767_v11  ;;  %v1227_v60 = vrot.slane %v469_v10, %v1770_v57 }
 0x183   :  { %v1154_v13 = vsel %vm758_vm15, %v1153_v59, %v1149_v49  ;;  %v1228_v22 = vsel %vm751_vm14, %v1227_v60, %v1223_v58 }
 0x184   :  { %v1322_v56 = vsel %vm1321_vm1, %v1154_v13, %v2089_v0  ;;  %v472_v16 = vpop.xlane.xlu1 %471  ;;  %v514_v17 = vpop.xlane.xlu0 %513 }
 0x185   :  { %v1232_v27 = vrot.slane %v472_v16, %v1767_v11  ;;  %v1301_v23 = vrot.slane %v514_v17, %v1745_v38 }
 0x187   :  { %v1233_v0 = vsel %vm758_vm15, %v1232_v27, %v1228_v22  ;;  %v1302_v32 = vsel %vm744_vm13, %v1301_v23, %v1297_v24 }
 0x188   :  { %v1324_v18 = vsel %vm1323_vm2, %v1233_v0, %v1322_v56  ;;  %v517_v44 = vpop.xlane.xlu0 %516  ;;  %v520_v42 = vpop.xlane.xlu1 %519 }
 0x189   :  { %v1306_v29 = vrot.slane %v517_v44, %v1770_v57  ;;  %v1311_v30 = vrot.slane %v520_v42, %v1767_v11 }
 0x18b   :  { %v1307_v38 = vsel %vm751_vm14, %v1306_v29, %v1302_v32 }
 0x18c   :  { %v1312_v33 = vsel %vm758_vm15, %v1311_v30, %v1307_v38 }
 0x18d   :  { %v1326_v36 = vsel %vm1325_vm6, %v1312_v33, %v1324_v18 }
 0x18e   :  { %1328 = vst [vmem:[%s2222_s1] sm:$0xff] %v1326_v36 }

</bundles_post_ra>
